<compile_context>
chip_gen: v6e
topology: v6e:2x2x1
jax: 0.10.0
libtpu: 0.0.40
codegen_flags: <defaults>
</compile_context>

<pallas_src>
import numpy as np
import jax
import jax.numpy as jnp
from jax.experimental import pallas as pl
from jax.experimental.pallas import tpu as pltpu

HIDDEN = 32        # fix_hidden_channels=True -> GAT hidden_channels = 32
NEG_SLOPE = 0.2    # GATConv leaky_relu slope
LN_EPS = 1e-5      # PyG LayerNorm eps


def _elu(v):
    # ELU(alpha=1); clamp the exp arg so the unused branch stays finite.
    return jnp.where(v > 0, v, jnp.exp(jnp.minimum(v, 0.0)) - 1.0)


def make_smgnn_kernel(B, N, H, C, F):
    BN = B * N
    CF = C * F

    def kernel(x_ref, mask_ref, adjb_ref, vecs_ref, mats_ref, out_ref):
        xm = x_ref[...] * mask_ref[...]            # (BN, 1) drug nodes zeroed
        adj_bias = adjb_ref[...]                   # (BN, BN) additive edge mask
        vecs = vecs_ref[...]                       # (12, VW) per-feature params
        mats = mats_ref[...]                       # (2H+BN+B, MW) matrices

        # ---- unpack the vector slab (static slices, no extra DMAs) ----
        w1 = vecs[0:1, 0:H]
        as1, ad1, b1 = vecs[1:2, 0:H], vecs[2:3, 0:H], vecs[3:4, 0:H]
        g1, be1 = vecs[4:5, 0:H], vecs[5:6, 0:H]
        as2, ad2, b2 = vecs[6:7, 0:H], vecs[7:8, 0:H], vecs[8:9, 0:H]
        g2, be2 = vecs[9:10, 0:H], vecs[10:11, 0:H]
        bl_perm = vecs[11:12, 0:CF]                # bl_perm[c*F+f] = bl[c]

        # ---- unpack the matrix slab ----
        w2 = mats[0:H, 0:H]                        # GATConv2 lin weight
        we = mats[H:2 * H, 0:CF]                   # jk Linear, channel-replicated
        node_sel = mats[2 * H:2 * H + BN, 0:CF]    # function-node selector mask
        block_sum = mats[2 * H + BN:2 * H + BN + B, 0:BN]   # per-batch reducer

        def gat(hp, a_src, a_dst, bias):
            # hp: (BN, H) linearly transformed node features
            asrc = jnp.sum(hp * a_src, axis=-1)            # (BN,)
            adst = jnp.sum(hp * a_dst, axis=-1)            # (BN,)
            e = adst[:, None] + asrc[None, :]              # (BN_tgt, BN_src)
            e = jnp.where(e > 0, e, NEG_SLOPE * e)         # leaky relu
            e = e + adj_bias                               # non-edges -> -1e30
            e = e - jnp.max(e, axis=-1, keepdims=True)
            p = jnp.exp(e)
            denom = jnp.sum(p, axis=-1, keepdims=True)
            attn = p * pl.reciprocal(denom, approx=True)   # edge softmax / target
            out = jnp.dot(attn, hp, preferred_element_type=jnp.float32)
            return out + bias

        def graph_layer_norm(h, gamma, beta):
            # PyG LayerNorm(mode='graph', batch=None): global mean/std over all
            # B*N nodes and all features; single fused sum / sum-of-squares pass.
            mu = jnp.mean(h, keepdims=True)                # (1, 1)
            msq = jnp.mean(h * h, keepdims=True)           # (1, 1)
            var = jnp.maximum(msq - mu * mu, 0.0)
            inv = pl.reciprocal(jnp.sqrt(var) + LN_EPS, approx=True)
            return (h - mu) * inv * gamma + beta

        # ---- GATConv 1 (Cin=1 -> H) + LayerNorm + ELU (dropout: eval -> id) ----
        hp1 = xm * w1                                       # (BN,1)*(1,H) -> (BN,H)
        h1 = _elu(graph_layer_norm(gat(hp1, as1, ad1, b1), g1, be1))

        # ---- GATConv 2 (H -> H) + LayerNorm + ELU ----
        hp2 = jnp.dot(h1, w2, preferred_element_type=jnp.float32)
        h2 = _elu(graph_layer_norm(gat(hp2, as2, ad2, b2), g2, be2))

        # ---- fused jk='last' Linear + function-node select + permute + sigmoid
        # g[m, c*F+f] = (h2 @ wl)[m, c]; node_sel zeroes rows that are not the
        # f-th function node of their batch block; block_sum collapses each
        # block, so out[b, c*F+f] = sigmoid(h2[b*N+fn[f]] . wl[:, c] + bl[c]).
        g = jnp.dot(h2, we, preferred_element_type=jnp.float32)     # (BN, CF)
        z = g * node_sel
        logits = jnp.dot(block_sum, z,
                         preferred_element_type=jnp.float32) + bl_perm   # (B, CF)
        out_ref[...] = jax.nn.sigmoid(logits)

    return kernel


def pack_smgnn_inputs(adj, node_mask, function_nodes, params, B, N, channels):
    """One-time packing of graph + parameters into a few dense VMEM slabs."""
    H = HIDDEN
    fn = [int(i) for i in np.asarray(function_nodes).reshape(-1)]
    F = len(fn)
    CF = channels * F
    BN = B * N

    # Block-diagonal additive attention mask: 0 on edges (incl. self loops) of
    # each disjoint batch copy, -1e30 everywhere else.
    adj_np = np.asarray(adj, np.float32)
    big = np.kron(np.eye(B, dtype=np.float32), adj_np)
    adj_bias = np.where(big > 0.0, 0.0, -1e30).astype(np.float32)

    # Per-node keep-mask tiled over the batch, as a column vector.
    mask_flat = np.tile(np.asarray(node_mask, np.float32).reshape(-1), B)
    mask_flat = mask_flat.reshape(BN, 1).astype(np.float32)

    (w1, as1, ad1, b1, g1, be1,
     w2, as2, ad2, b2, g2, be2, wl, bl) = [jnp.asarray(p, jnp.float32)
                                           for p in params]

    # ---- vector slab: one row per per-feature parameter ----------------------
    bl_perm = jnp.repeat(bl.reshape(-1), F)            # bl_perm[c*F+f] = bl[c]
    VW = max(H, CF)

    def row(v):
        v = v.reshape(-1)
        return jnp.pad(v, (0, VW - v.shape[0]))

    vecs = jnp.stack([row(w1), row(as1), row(ad1), row(b1), row(g1), row(be1),
                      row(as2), row(ad2), row(b2), row(g2), row(be2),
                      row(bl_perm)]).astype(jnp.float32)            # (12, VW)

    # ---- matrix slab: w2, fused output head, selection/permute constants -----
    we = jnp.repeat(wl, F, axis=1)                     # (H, CF): we[:,c*F+f]=wl[:,c]

    node_sel = np.zeros((BN, CF), np.float32)          # picks function nodes
    for b in range(B):
        for f, n in enumerate(fn):
            for c in range(channels):
                node_sel[b * N + n, c * F + f] = 1.0

    block_sum = np.zeros((B, BN), np.float32)          # per-batch block reduce
    for b in range(B):
        block_sum[b, b * N:(b + 1) * N] = 1.0

    MW = max(H, CF, BN)

    def pad_cols(m):
        m = jnp.asarray(m, jnp.float32)
        return jnp.pad(m, ((0, 0), (0, MW - m.shape[1])))

    mats = jnp.concatenate([pad_cols(w2), pad_cols(we),
                            pad_cols(node_sel), pad_cols(block_sum)],
                           axis=0)                     # (2H+BN+B, MW)

    return jnp.asarray(adj_bias), jnp.asarray(mask_flat), vecs, mats


def smgnn_forward(x, packed, channels, num_function_nodes):
    """x: (B, N, 1) float32 -> (B, channels * num_function_nodes, 1)."""
    B, N, _ = x.shape
    F = num_function_nodes
    CF = channels * F
    adj_bias, mask_flat, vecs, mats = packed
    x_flat = x.reshape(B * N, 1)

    kernel = make_smgnn_kernel(B, N, HIDDEN, channels, F)
    in_arrays = (x_flat, mask_flat, adj_bias, vecs, mats)

    def _spec(shape):
        nd = len(shape)
        return pl.BlockSpec(shape, lambda i, _nd=nd: (0,) * _nd)

    out = pl.pallas_call(
        kernel,
        out_shape=jax.ShapeDtypeStruct((B, CF), jnp.float32),
        grid=(1,),
        in_specs=[_spec(a.shape) for a in in_arrays],
        out_specs=pl.BlockSpec((B, CF), lambda i: (0, 0)),
        compiler_params=pltpu.CompilerParams(dimension_semantics=("arbitrary",)),
    )(*in_arrays)

    # Selection + permute already happened in-kernel; only a trivial
    # trailing-dim expand remains.
    return out.reshape(B, CF, 1)


if __name__ == "__main__":
    B, N, CHANNELS = 2, 16, 4

    # ---- deterministic synthetic graph (ring + skip edges, no duplicates) ----
    src = np.concatenate([np.arange(N), np.arange(N)])
    dst = np.concatenate([(np.arange(N) + 1) % N, (np.arange(N) + 3) % N])
    adj_np = np.zeros((N, N), np.float32)
    adj_np[dst, src] = 1.0                        # message source -> target
    adj_np[np.arange(N), np.arange(N)] = 1.0      # GATConv add_self_loops=True

    # nodes 0, 1 are "DRUG__" nodes -> input features zeroed
    mask_np = np.ones((N,), np.float32)
    mask_np[:2] = 0.0

    function_nodes = np.asarray([3, 5, 7, 11], dtype=np.int32)
    F = int(function_nodes.shape[0])

    # ---- deterministic parameter init (synthetic, not a checkpoint) ----
    key = jax.random.PRNGKey(0)
    ks = jax.random.split(key, 12)

    def init(k, shape, scale=0.3):
        return (scale * jax.random.normal(k, shape)).astype(jnp.float32)

    params = (
        init(ks[0], (1, HIDDEN)),             # w1   : GATConv1 lin weight (Cin=1)
        init(ks[1], (1, HIDDEN)),             # att_src1
        init(ks[2], (1, HIDDEN)),             # att_dst1
        init(ks[3], (1, HIDDEN), 0.1),        # bias1
        jnp.ones((1, HIDDEN), jnp.float32),   # layernorm1 gamma
        jnp.zeros((1, HIDDEN), jnp.float32),  # layernorm1 beta
        init(ks[4], (HIDDEN, HIDDEN), 0.2),   # w2   : GATConv2 lin weight
        init(ks[5], (1, HIDDEN)),             # att_src2
        init(ks[6], (1, HIDDEN)),             # att_dst2
        init(ks[7], (1, HIDDEN), 0.1),        # bias2
        jnp.ones((1, HIDDEN), jnp.float32),   # layernorm2 gamma
        jnp.zeros((1, HIDDEN), jnp.float32),  # layernorm2 beta
        init(ks[8], (HIDDEN, CHANNELS), 0.2), # wl   : jk='last' Linear weight
        init(ks[9], (1, CHANNELS), 0.1),      # bl   : jk='last' Linear bias
    )

    x = jax.random.normal(ks[10], (B, N, 1), dtype=jnp.float32)

    packed = pack_smgnn_inputs(adj_np, mask_np, function_nodes, params,
                               B, N, CHANNELS)
    out = smgnn_forward(x, packed, CHANNELS, F)
    out = jax.block_until_ready(out)

    assert out.shape == (B, CHANNELS * F, 1), out.shape
    assert bool(jnp.all(jnp.isfinite(out)))
    assert bool(jnp.all((out > 0.0) & (out < 1.0)))   # sigmoid range
    print("KERNEL_OK")
</pallas_src>

<mosaic_0001>
module attributes {stable_mosaic.version = 11 : i64} {
  func.func @kernel(%arg0: i32, %arg1: memref<32x1xf32, #tpu.memory_space<vmem>>, %arg2: memref<32x1xf32, #tpu.memory_space<vmem>>, %arg3: memref<32x32xf32, #tpu.memory_space<vmem>>, %arg4: memref<12x32xf32, #tpu.memory_space<vmem>>, %arg5: memref<98x32xf32, #tpu.memory_space<vmem>>, %arg6: memref<2x16xf32, #tpu.memory_space<vmem>>) attributes {dimension_semantics = [#tpu.dimension_semantics<arbitrary>], iteration_bounds = array<i64: 1>, scalar_prefetch = 0 : i64, scratch_operands = 0 : i64, tpu.core_type = #tpu.core_type<tc>, window_params = [{pipeline_mode = #tpu.pipeline_mode<synchronous>, transform_indices = @transform_0, window_bounds = array<i64: 32, 1>}, {pipeline_mode = #tpu.pipeline_mode<synchronous>, transform_indices = @transform_1, window_bounds = array<i64: 32, 1>}, {pipeline_mode = #tpu.pipeline_mode<synchronous>, transform_indices = @transform_2, window_bounds = array<i64: 32, 32>}, {pipeline_mode = #tpu.pipeline_mode<synchronous>, transform_indices = @transform_3, window_bounds = array<i64: 12, 32>}, {pipeline_mode = #tpu.pipeline_mode<synchronous>, transform_indices = @transform_4, window_bounds = array<i64: 98, 32>}, {pipeline_mode = #tpu.pipeline_mode<synchronous>, transform_indices = @transform_5, window_bounds = array<i64: 2, 16>}]} {
    %c0 = arith.constant 0 : index
    %c0_0 = arith.constant 0 : index
    %0 = vector.load %arg1[%c0, %c0_0] : memref<32x1xf32, #tpu.memory_space<vmem>>, vector<32x1xf32>
    %c0_1 = arith.constant 0 : index
    %c0_2 = arith.constant 0 : index
    %1 = vector.load %arg2[%c0_1, %c0_2] : memref<32x1xf32, #tpu.memory_space<vmem>>, vector<32x1xf32>
    %2 = arith.mulf %0, %1 : vector<32x1xf32>
    %c0_3 = arith.constant 0 : index
    %c0_4 = arith.constant 0 : index
    %3 = vector.load %arg3[%c0_3, %c0_4] : memref<32x32xf32, #tpu.memory_space<vmem>>, vector<32x32xf32>
    %c0_5 = arith.constant 0 : index
    %c0_6 = arith.constant 0 : index
    %4 = vector.load %arg4[%c0_5, %c0_6] : memref<12x32xf32, #tpu.memory_space<vmem>>, vector<12x32xf32>
    %c0_7 = arith.constant 0 : index
    %c0_8 = arith.constant 0 : index
    %5 = vector.load %arg5[%c0_7, %c0_8] : memref<98x32xf32, #tpu.memory_space<vmem>>, vector<98x32xf32>
    %6 = vector.extract_strided_slice %4 {offsets = [0, 0], sizes = [1, 32], strides = [1, 1]} : vector<12x32xf32> to vector<1x32xf32>
    %7 = vector.extract_strided_slice %4 {offsets = [1, 0], sizes = [1, 32], strides = [1, 1]} : vector<12x32xf32> to vector<1x32xf32>
    %8 = vector.extract_strided_slice %4 {offsets = [2, 0], sizes = [1, 32], strides = [1, 1]} : vector<12x32xf32> to vector<1x32xf32>
    %9 = vector.extract_strided_slice %4 {offsets = [3, 0], sizes = [1, 32], strides = [1, 1]} : vector<12x32xf32> to vector<1x32xf32>
    %10 = vector.extract_strided_slice %4 {offsets = [4, 0], sizes = [1, 32], strides = [1, 1]} : vector<12x32xf32> to vector<1x32xf32>
    %11 = vector.extract_strided_slice %4 {offsets = [5, 0], sizes = [1, 32], strides = [1, 1]} : vector<12x32xf32> to vector<1x32xf32>
    %12 = vector.extract_strided_slice %4 {offsets = [6, 0], sizes = [1, 32], strides = [1, 1]} : vector<12x32xf32> to vector<1x32xf32>
    %13 = vector.extract_strided_slice %4 {offsets = [7, 0], sizes = [1, 32], strides = [1, 1]} : vector<12x32xf32> to vector<1x32xf32>
    %14 = vector.extract_strided_slice %4 {offsets = [8, 0], sizes = [1, 32], strides = [1, 1]} : vector<12x32xf32> to vector<1x32xf32>
    %15 = vector.extract_strided_slice %4 {offsets = [9, 0], sizes = [1, 32], strides = [1, 1]} : vector<12x32xf32> to vector<1x32xf32>
    %16 = vector.extract_strided_slice %4 {offsets = [10, 0], sizes = [1, 32], strides = [1, 1]} : vector<12x32xf32> to vector<1x32xf32>
    %17 = vector.extract_strided_slice %4 {offsets = [11, 0], sizes = [1, 16], strides = [1, 1]} : vector<12x32xf32> to vector<1x16xf32>
    %18 = vector.extract_strided_slice %5 {offsets = [0, 0], sizes = [32, 32], strides = [1, 1]} : vector<98x32xf32> to vector<32x32xf32>
    %19 = vector.extract_strided_slice %5 {offsets = [32, 0], sizes = [32, 16], strides = [1, 1]} : vector<98x32xf32> to vector<32x16xf32>
    %20 = vector.extract_strided_slice %5 {offsets = [64, 0], sizes = [32, 16], strides = [1, 1]} : vector<98x32xf32> to vector<32x16xf32>
    %21 = vector.extract_strided_slice %5 {offsets = [96, 0], sizes = [2, 32], strides = [1, 1]} : vector<98x32xf32> to vector<2x32xf32>
    %22 = vector.broadcast %2 : vector<32x1xf32> to vector<32x32xf32>
    %23 = vector.broadcast %6 : vector<1x32xf32> to vector<32x32xf32>
    %24 = arith.mulf %22, %23 : vector<32x32xf32>
    %25 = vector.broadcast %7 : vector<1x32xf32> to vector<32x32xf32>
    %26 = arith.mulf %24, %25 : vector<32x32xf32>
    %cst = arith.constant dense<0.000000e+00> : vector<32xf32>
    %27 = vector.multi_reduction <add>, %26, %cst [1] : vector<32x32xf32> to vector<32xf32>
    %28 = vector.broadcast %8 : vector<1x32xf32> to vector<32x32xf32>
    %29 = arith.mulf %24, %28 : vector<32x32xf32>
    %cst_9 = arith.constant dense<0.000000e+00> : vector<32xf32>
    %30 = vector.multi_reduction <add>, %29, %cst_9 [1] : vector<32x32xf32> to vector<32xf32>
    %31 = vector.shape_cast %30 : vector<32xf32> to vector<32x1xf32>
    %32 = vector.shape_cast %27 : vector<32xf32> to vector<1x32xf32>
    %33 = vector.broadcast %31 : vector<32x1xf32> to vector<32x32xf32>
    %34 = vector.broadcast %32 : vector<1x32xf32> to vector<32x32xf32>
    %35 = arith.addf %33, %34 : vector<32x32xf32>
    %cst_10 = arith.constant 0.000000e+00 : f32
    %36 = vector.broadcast %cst_10 : f32 to vector<32x32xf32>
    %37 = arith.cmpf ogt, %35, %36 : vector<32x32xf32>
    %cst_11 = arith.constant 2.000000e-01 : f32
    %38 = vector.broadcast %cst_11 : f32 to vector<32x32xf32>
    %39 = arith.mulf %38, %35 : vector<32x32xf32>
    %40 = arith.select %37, %35, %39 : vector<32x32xi1>, vector<32x32xf32>
    %41 = arith.addf %40, %3 : vector<32x32xf32>
    %cst_12 = arith.constant dense<0xFF800000> : vector<32xf32>
    %42 = vector.multi_reduction <maximumf>, %41, %cst_12 [1] : vector<32x32xf32> to vector<32xf32>
    %43 = vector.shape_cast %42 : vector<32xf32> to vector<32x1xf32>
    %44 = vector.broadcast %43 : vector<32x1xf32> to vector<32x32xf32>
    %45 = arith.subf %41, %44 : vector<32x32xf32>
    %46 = math.exp %45 : vector<32x32xf32>
    %cst_13 = arith.constant dense<0.000000e+00> : vector<32xf32>
    %47 = vector.multi_reduction <add>, %46, %cst_13 [1] : vector<32x32xf32> to vector<32xf32>
    %48 = vector.shape_cast %47 : vector<32xf32> to vector<32x1xf32>
    %49 = tpu.reciprocal %48 {approx = true} : vector<32x1xf32> -> vector<32x1xf32>
    %50 = vector.broadcast %49 : vector<32x1xf32> to vector<32x32xf32>
    %51 = arith.mulf %46, %50 : vector<32x32xf32>
    %cst_14 = arith.constant dense<0.000000e+00> : vector<32x32xf32>
    %52 = tpu.matmul %51, %24, %cst_14 {dimension_numbers = #tpu.dot_dimension_numbers<[1], [0], [0], [1], [0, 0, 1, 1], [], []>} : vector<32x32xf32>, vector<32x32xf32>, vector<32x32xf32> -> vector<32x32xf32>
    %53 = vector.broadcast %9 : vector<1x32xf32> to vector<32x32xf32>
    %54 = arith.addf %52, %53 : vector<32x32xf32>
    %55 = vector.shape_cast %54 : vector<32x32xf32> to vector<1x32x32xf32>
    %cst_15 = arith.constant dense<0.000000e+00> : vector<1xf32>
    %56 = vector.multi_reduction <add>, %55, %cst_15 [1, 2] : vector<1x32x32xf32> to vector<1xf32>
    %57 = vector.shape_cast %56 : vector<1xf32> to vector<1x1x1xf32>
    %58 = vector.extract %57[0, 0, 0] : f32 from vector<1x1x1xf32>
    %59 = vector.broadcast %58 : f32 to vector<1x1xf32>
    %cst_16 = arith.constant 1.024000e+03 : f32
    %60 = vector.broadcast %cst_16 : f32 to vector<1x1xf32>
    %61 = arith.divf %59, %60 : vector<1x1xf32>
    %62 = arith.mulf %54, %54 : vector<32x32xf32>
    %63 = vector.shape_cast %62 : vector<32x32xf32> to vector<1x32x32xf32>
    %cst_17 = arith.constant dense<0.000000e+00> : vector<1xf32>
    %64 = vector.multi_reduction <add>, %63, %cst_17 [1, 2] : vector<1x32x32xf32> to vector<1xf32>
    %65 = vector.shape_cast %64 : vector<1xf32> to vector<1x1x1xf32>
    %66 = vector.extract %65[0, 0, 0] : f32 from vector<1x1x1xf32>
    %67 = vector.broadcast %66 : f32 to vector<1x1xf32>
    %cst_18 = arith.constant 1.024000e+03 : f32
    %68 = vector.broadcast %cst_18 : f32 to vector<1x1xf32>
    %69 = arith.divf %67, %68 : vector<1x1xf32>
    %70 = arith.mulf %61, %61 : vector<1x1xf32>
    %71 = arith.subf %69, %70 : vector<1x1xf32>
    %cst_19 = arith.constant 0.000000e+00 : f32
    %72 = vector.broadcast %cst_19 : f32 to vector<1x1xf32>
    %73 = arith.maximumf %71, %72 : vector<1x1xf32>
    %74 = math.sqrt %73 : vector<1x1xf32>
    %cst_20 = arith.constant 9.99999974E-6 : f32
    %75 = vector.broadcast %cst_20 : f32 to vector<1x1xf32>
    %76 = arith.addf %74, %75 : vector<1x1xf32>
    %77 = tpu.reciprocal %76 {approx = true} : vector<1x1xf32> -> vector<1x1xf32>
    %78 = vector.broadcast %61 : vector<1x1xf32> to vector<32x32xf32>
    %79 = arith.subf %54, %78 : vector<32x32xf32>
    %80 = vector.broadcast %77 : vector<1x1xf32> to vector<32x32xf32>
    %81 = arith.mulf %79, %80 : vector<32x32xf32>
    %82 = vector.broadcast %10 : vector<1x32xf32> to vector<32x32xf32>
    %83 = arith.mulf %81, %82 : vector<32x32xf32>
    %84 = vector.broadcast %11 : vector<1x32xf32> to vector<32x32xf32>
    %85 = arith.addf %83, %84 : vector<32x32xf32>
    %cst_21 = arith.constant 0.000000e+00 : f32
    %86 = vector.broadcast %cst_21 : f32 to vector<32x32xf32>
    %87 = arith.cmpf ogt, %85, %86 : vector<32x32xf32>
    %cst_22 = arith.constant 0.000000e+00 : f32
    %88 = vector.broadcast %cst_22 : f32 to vector<32x32xf32>
    %89 = arith.minimumf %85, %88 : vector<32x32xf32>
    %90 = math.exp %89 : vector<32x32xf32>
    %cst_23 = arith.constant 1.000000e+00 : f32
    %91 = vector.broadcast %cst_23 : f32 to vector<32x32xf32>
    %92 = arith.subf %90, %91 : vector<32x32xf32>
    %93 = arith.select %87, %85, %92 : vector<32x32xi1>, vector<32x32xf32>
    %cst_24 = arith.constant dense<0.000000e+00> : vector<32x32xf32>
    %94 = tpu.matmul %93, %18, %cst_24 {dimension_numbers = #tpu.dot_dimension_numbers<[1], [0], [0], [1], [0, 0, 1, 1], [], []>} : vector<32x32xf32>, vector<32x32xf32>, vector<32x32xf32> -> vector<32x32xf32>
    %95 = vector.broadcast %12 : vector<1x32xf32> to vector<32x32xf32>
    %96 = arith.mulf %94, %95 : vector<32x32xf32>
    %cst_25 = arith.constant dense<0.000000e+00> : vector<32xf32>
    %97 = vector.multi_reduction <add>, %96, %cst_25 [1] : vector<32x32xf32> to vector<32xf32>
    %98 = vector.broadcast %13 : vector<1x32xf32> to vector<32x32xf32>
    %99 = arith.mulf %94, %98 : vector<32x32xf32>
    %cst_26 = arith.constant dense<0.000000e+00> : vector<32xf32>
    %100 = vector.multi_reduction <add>, %99, %cst_26 [1] : vector<32x32xf32> to vector<32xf32>
    %101 = vector.shape_cast %100 : vector<32xf32> to vector<32x1xf32>
    %102 = vector.shape_cast %97 : vector<32xf32> to vector<1x32xf32>
    %103 = vector.broadcast %101 : vector<32x1xf32> to vector<32x32xf32>
    %104 = vector.broadcast %102 : vector<1x32xf32> to vector<32x32xf32>
    %105 = arith.addf %103, %104 : vector<32x32xf32>
    %cst_27 = arith.constant 0.000000e+00 : f32
    %106 = vector.broadcast %cst_27 : f32 to vector<32x32xf32>
    %107 = arith.cmpf ogt, %105, %106 : vector<32x32xf32>
    %cst_28 = arith.constant 2.000000e-01 : f32
    %108 = vector.broadcast %cst_28 : f32 to vector<32x32xf32>
    %109 = arith.mulf %108, %105 : vector<32x32xf32>
    %110 = arith.select %107, %105, %109 : vector<32x32xi1>, vector<32x32xf32>
    %111 = arith.addf %110, %3 : vector<32x32xf32>
    %cst_29 = arith.constant dense<0xFF800000> : vector<32xf32>
    %112 = vector.multi_reduction <maximumf>, %111, %cst_29 [1] : vector<32x32xf32> to vector<32xf32>
    %113 = vector.shape_cast %112 : vector<32xf32> to vector<32x1xf32>
    %114 = vector.broadcast %113 : vector<32x1xf32> to vector<32x32xf32>
    %115 = arith.subf %111, %114 : vector<32x32xf32>
    %116 = math.exp %115 : vector<32x32xf32>
    %cst_30 = arith.constant dense<0.000000e+00> : vector<32xf32>
    %117 = vector.multi_reduction <add>, %116, %cst_30 [1] : vector<32x32xf32> to vector<32xf32>
    %118 = vector.shape_cast %117 : vector<32xf32> to vector<32x1xf32>
    %119 = tpu.reciprocal %118 {approx = true} : vector<32x1xf32> -> vector<32x1xf32>
    %120 = vector.broadcast %119 : vector<32x1xf32> to vector<32x32xf32>
    %121 = arith.mulf %116, %120 : vector<32x32xf32>
    %cst_31 = arith.constant dense<0.000000e+00> : vector<32x32xf32>
    %122 = tpu.matmul %121, %94, %cst_31 {dimension_numbers = #tpu.dot_dimension_numbers<[1], [0], [0], [1], [0, 0, 1, 1], [], []>} : vector<32x32xf32>, vector<32x32xf32>, vector<32x32xf32> -> vector<32x32xf32>
    %123 = vector.broadcast %14 : vector<1x32xf32> to vector<32x32xf32>
    %124 = arith.addf %122, %123 : vector<32x32xf32>
    %125 = vector.shape_cast %124 : vector<32x32xf32> to vector<1x32x32xf32>
    %cst_32 = arith.constant dense<0.000000e+00> : vector<1xf32>
    %126 = vector.multi_reduction <add>, %125, %cst_32 [1, 2] : vector<1x32x32xf32> to vector<1xf32>
    %127 = vector.shape_cast %126 : vector<1xf32> to vector<1x1x1xf32>
    %128 = vector.extract %127[0, 0, 0] : f32 from vector<1x1x1xf32>
    %129 = vector.broadcast %128 : f32 to vector<1x1xf32>
    %cst_33 = arith.constant 1.024000e+03 : f32
    %130 = vector.broadcast %cst_33 : f32 to vector<1x1xf32>
    %131 = arith.divf %129, %130 : vector<1x1xf32>
    %132 = arith.mulf %124, %124 : vector<32x32xf32>
    %133 = vector.shape_cast %132 : vector<32x32xf32> to vector<1x32x32xf32>
    %cst_34 = arith.constant dense<0.000000e+00> : vector<1xf32>
    %134 = vector.multi_reduction <add>, %133, %cst_34 [1, 2] : vector<1x32x32xf32> to vector<1xf32>
    %135 = vector.shape_cast %134 : vector<1xf32> to vector<1x1x1xf32>
    %136 = vector.extract %135[0, 0, 0] : f32 from vector<1x1x1xf32>
    %137 = vector.broadcast %136 : f32 to vector<1x1xf32>
    %cst_35 = arith.constant 1.024000e+03 : f32
    %138 = vector.broadcast %cst_35 : f32 to vector<1x1xf32>
    %139 = arith.divf %137, %138 : vector<1x1xf32>
    %140 = arith.mulf %131, %131 : vector<1x1xf32>
    %141 = arith.subf %139, %140 : vector<1x1xf32>
    %cst_36 = arith.constant 0.000000e+00 : f32
    %142 = vector.broadcast %cst_36 : f32 to vector<1x1xf32>
    %143 = arith.maximumf %141, %142 : vector<1x1xf32>
    %144 = math.sqrt %143 : vector<1x1xf32>
    %cst_37 = arith.constant 9.99999974E-6 : f32
    %145 = vector.broadcast %cst_37 : f32 to vector<1x1xf32>
    %146 = arith.addf %144, %145 : vector<1x1xf32>
    %147 = tpu.reciprocal %146 {approx = true} : vector<1x1xf32> -> vector<1x1xf32>
    %148 = vector.broadcast %131 : vector<1x1xf32> to vector<32x32xf32>
    %149 = arith.subf %124, %148 : vector<32x32xf32>
    %150 = vector.broadcast %147 : vector<1x1xf32> to vector<32x32xf32>
    %151 = arith.mulf %149, %150 : vector<32x32xf32>
    %152 = vector.broadcast %15 : vector<1x32xf32> to vector<32x32xf32>
    %153 = arith.mulf %151, %152 : vector<32x32xf32>
    %154 = vector.broadcast %16 : vector<1x32xf32> to vector<32x32xf32>
    %155 = arith.addf %153, %154 : vector<32x32xf32>
    %cst_38 = arith.constant 0.000000e+00 : f32
    %156 = vector.broadcast %cst_38 : f32 to vector<32x32xf32>
    %157 = arith.cmpf ogt, %155, %156 : vector<32x32xf32>
    %cst_39 = arith.constant 0.000000e+00 : f32
    %158 = vector.broadcast %cst_39 : f32 to vector<32x32xf32>
    %159 = arith.minimumf %155, %158 : vector<32x32xf32>
    %160 = math.exp %159 : vector<32x32xf32>
    %cst_40 = arith.constant 1.000000e+00 : f32
    %161 = vector.broadcast %cst_40 : f32 to vector<32x32xf32>
    %162 = arith.subf %160, %161 : vector<32x32xf32>
    %163 = arith.select %157, %155, %162 : vector<32x32xi1>, vector<32x32xf32>
    %cst_41 = arith.constant dense<0.000000e+00> : vector<32x16xf32>
    %164 = tpu.matmul %163, %19, %cst_41 {dimension_numbers = #tpu.dot_dimension_numbers<[1], [0], [0], [1], [0, 0, 1, 1], [], []>} : vector<32x32xf32>, vector<32x16xf32>, vector<32x16xf32> -> vector<32x16xf32>
    %165 = arith.mulf %164, %20 : vector<32x16xf32>
    %cst_42 = arith.constant dense<0.000000e+00> : vector<2x16xf32>
    %166 = tpu.matmul %21, %165, %cst_42 {dimension_numbers = #tpu.dot_dimension_numbers<[1], [0], [0], [1], [0, 0, 1, 1], [], []>} : vector<2x32xf32>, vector<32x16xf32>, vector<2x16xf32> -> vector<2x16xf32>
    %167 = vector.broadcast %17 : vector<1x16xf32> to vector<2x16xf32>
    %168 = arith.addf %166, %167 : vector<2x16xf32>
    %169 = arith.negf %168 : vector<2x16xf32>
    %170 = math.exp %169 : vector<2x16xf32>
    %cst_43 = arith.constant 1.000000e+00 : f32
    %171 = vector.broadcast %cst_43 : f32 to vector<2x16xf32>
    %172 = arith.addf %171, %170 : vector<2x16xf32>
    %173 = arith.divf %171, %172 : vector<2x16xf32>
    %c0_44 = arith.constant 0 : index
    %c0_45 = arith.constant 0 : index
    %174 = vector.load %arg6[%c0_44, %c0_45] : memref<2x16xf32, #tpu.memory_space<vmem>>, vector<2x16xf32>
    tpu.vector_store %arg6[%c0_44, %c0_45], %173 {strides = array<i32>} : memref<2x16xf32, #tpu.memory_space<vmem>>, vector<2x16xf32>,
    return
  }
  func.func @transform_0(%arg0: i32) -> (i32, i32) {
    %c0_i32 = arith.constant 0 : i32
    %c0_i32_0 = arith.constant 0 : i32
    %c0_i32_1 = arith.constant 0 : i32
    return %c0_i32, %c0_i32_0 : i32, i32
  }
  func.func @transform_1(%arg0: i32) -> (i32, i32) {
    %c0_i32 = arith.constant 0 : i32
    %c0_i32_0 = arith.constant 0 : i32
    %c0_i32_1 = arith.constant 0 : i32
    return %c0_i32, %c0_i32_0 : i32, i32
  }
  func.func @transform_2(%arg0: i32) -> (i32, i32) {
    %c0_i32 = arith.constant 0 : i32
    %c0_i32_0 = arith.constant 0 : i32
    %c0_i32_1 = arith.constant 0 : i32
    return %c0_i32, %c0_i32_0 : i32, i32
  }
  func.func @transform_3(%arg0: i32) -> (i32, i32) {
    %c0_i32 = arith.constant 0 : i32
    %c0_i32_0 = arith.constant 0 : i32
    %c0_i32_1 = arith.constant 0 : i32
    return %c0_i32, %c0_i32_0 : i32, i32
  }
  func.func @transform_4(%arg0: i32) -> (i32, i32) {
    %c0_i32 = arith.constant 0 : i32
    %c0_i32_0 = arith.constant 0 : i32
    %c0_i32_1 = arith.constant 0 : i32
    return %c0_i32, %c0_i32_0 : i32, i32
  }
  func.func @transform_5(%arg0: i32) -> (i32, i32) {
    %c0_i32 = arith.constant 0 : i32
    %c0_i32_0 = arith.constant 0 : i32
    %c0_i32_1 = arith.constant 0 : i32
    return %c0_i32, %c0_i32_0 : i32, i32
  }
}

</mosaic_0001>

<bundles_post_ra>
// kernel: tpu_custom_call.1
= control target key start
LH: loop header
LB: loop body
LE: loop exit
PB: predicated region body
PF: predicated region fallthrough
CT: control target
= control target key end

     0   :  { %v1289_v3 = vmov 0   ;;  %s1604_s0 = inlined_call_operand.vmem [shape: f32[32,1], index: 0, kind: input, shape index: {}]   ;;  %s1605_s1 = inlined_call_operand.vmem [shape: f32[32,1], index: 1, kind: input, shape index: {}]   ;;  %s1606_s2 = inlined_call_operand.vmem [shape: f32[32,32], index: 2, kind: input, shape index: {}]   ;;  %s1607_s3 = inlined_call_operand.vmem [shape: f32[12,32], index: 3, kind: input, shape index: {}]   ;;  %s1608_s4 = inlined_call_operand.vmem [shape: f32[98,32], index: 4, kind: input, shape index: {}]   ;;  %s1609_s5 = inlined_call_operand.hbm [shape: f32[2,16], index: 5, kind: output, shape index: {}]  }
   0x1   :  { %v23_v0 = vld [vmem:[%s1604_s0 + $0x10] sm:$0xff]  ;;  %v21_v2 = vld [vmem:[%s1604_s0] sm:$0xff]  ;;  %1206 = vset.pattern.permute.xlu1 %v1289_v3  ;;  %1205 = vset.pattern.permute.xlu0 %v1289_v3  ;;  %v24_v6 = vld [vmem:[%s1604_s0 + $0x18] sm:$0xff] }
   0x2   :  { %v27_v1 = vld [vmem:[%s1605_s1 + $0x10] sm:$0xff]  ;;  %v25_v5 = vld [vmem:[%s1605_s1] sm:$0xff]  ;;  %v28_v7 = vld [vmem:[%s1605_s1 + $0x18] sm:$0xff] }
   0x3   :  { %v31_v4 = vmul.f32 %v27_v1, %v23_v0  ;;  %v29_v8 = vmul.f32 %v25_v5, %v21_v2  ;;  %v22_v9 = vld [vmem:[%s1604_s0 + $0x8] sm:$0xff]  ;;  %v32_v11 = vmul.f32 %v28_v7, %v24_v6 }
   0x4   :  { %v26_v10 = vld [vmem:[%s1605_s1 + $0x8] sm:$0xff] }
   0x5   :  { %64 = vperm.xlu1 %1206, %v31_v4  }
   0x6   :  { %10 = vsyncpa [#allocation3], 0  ;;  %54 = vperm.xlu0 %1205, %v29_v8   ;;  %v30_v12 = vmul.f32 %v26_v10, %v22_v9  ;;  %v72_v13 = vlaneseq  ;;  %v1353_v16 = vld [vmem:[%s1607_s3] sm:$0xff]  ;;  %vm88_vm0 = vcmask 261120   ;;  %vm136_vm1 = vcmask 130112   ;;  %v1401_v10 = vld [vmem:[%s1606_s2 + $0x8] sm:$0xff] }
   0x7   :  { %vm143_vm2 = vcmask 195712   ;;  %vm150_vm3 = vcmask 261312   ;;  %v1396_v7 = vld [vmem:[%s1606_s2] sm:$0xff]  ;;  %s1292_s19 = smov [#allocation2]  }
   0x8   :  { %v1347_v14 = vshrl.u32 %v72_v13, 7  ;;  %v126_v46 = vand.u32 127, %v72_v13  ;;  %s1055_s20 = sshll.u32 %s1292_s19, 4  ;;  %s1056_s20 = int_to_ptr.vmem [resolvable:$true] %s1055_s20 }
   0x9   :  { %69 = vperm.xlu1 %1206, %v32_v11   ;;  %p1272_p1 = scmp.lt.s32.totalorder %s1056_s20, %s1056_s20 }
   0xa   :  { %59 = vperm.xlu0 %1205, %v30_v12   ;;  %v74_v15 = vsub.s32 0, %v1347_v14  ;;  %v82_v17 = vsub.s32 1, %v1347_v14  ;;  %v103_v24 = vsub.s32 2, %v1347_v14  ;;  %v131_v47 = vadd.s32 4294967288, %v126_v46 }
   0xb   :  { %v138_v48 = vadd.s32 4294967280, %v126_v46  ;;  %v1375_v50 = vsub.s32 %v126_v46, %v1347_v14  ;;  %v145_v52 = vadd.s32 4294967272, %v126_v46 }
   0xc   :  { %v75_v18 = vrot.slane %v1353_v16, %v74_v15  ;;  %v83_v20 = vrot.slane %v1353_v16, %v82_v17  ;;  %v104_v32 = vrot.slane %v1353_v16, %v103_v24  ;;  %v1378_v51 = vsub.s32 %v131_v47, %v1347_v14 }
   0xd   :  { %v1381_v53 = vsub.s32 %v138_v48, %v1347_v14  ;;  %v1386_v58 = vsub.s32 %v145_v52, %v1347_v14 }
  0x80   :  { %v65_v19 = vpop.permute.xlu1 %64 }
  0x81   :  { %v78_v21 = vmul.f32 %v75_v18, %v65_v19  ;;  %v55_v22 = vpop.permute.xlu0 %54 }
  0x82   :  { %v76_v23 = vmul.f32 %v75_v18, %v55_v22 }
  0x83   :  { %v86_v27 = vmul.f32 %v83_v20, %v78_v21  ;;  %v107_v41 = vmul.f32 %v104_v32, %v78_v21 }
  0x84   :  { %v70_v25 = vpop.permute.xlu1 %69  ;;  %v84_v26 = vmul.f32 %v83_v20, %v76_v23  ;;  %v105_v37 = vmul.f32 %v104_v32, %v76_v23 }
  0x85   :  { %v79_v28 = vmul.f32 %v75_v18, %v70_v25  ;;  %v60_v29 = vpop.permute.xlu0 %59  ;;  %v95_v33 = vsel %vm88_vm0, %v86_v27, 0.0  ;;  %v115_v44 = vsel %vm88_vm0, %v107_v41, 0.0 }
  0x86   :  { %v77_v30 = vmul.f32 %v75_v18, %v60_v29  ;;  %v89_v31 = vsel %vm88_vm0, %v84_v26, 0.0  ;;  %v109_v40 = vsel %vm88_vm0, %v105_v37, 0.0  ;;  %v1406_v18 = vld [vmem:[%s1606_s2 + $0x10] sm:$0xff] }
  0x87   :  { %90 = vadd.xlane.f32.xlu0 %v89_v31  ;;  %1126 = vmatprep.subr.mxu0 %v79_v28  ;;  %v87_v36 = vmul.f32 %v83_v20, %v79_v28  ;;  %v108_v43 = vmul.f32 %v104_v32, %v79_v28 }
  0x88   :  { %1127 = vmatpush3.msra.mxu0 %v79_v28  ;;  %v85_v34 = vmul.f32 %v83_v20, %v77_v30  ;;  %v106_v39 = vmul.f32 %v104_v32, %v77_v30  ;;  %v1415_v28 = vld [vmem:[%s1606_s2 + $0x18] sm:$0xff] }
  0x89   :  { %1128 = vmatprep.subr.mxu0 %v78_v21  ;;  %v98_v38 = vsel %vm88_vm0, %v87_v36, 0.0  ;;  %v118_v45 = vsel %vm88_vm0, %v108_v43, 0.0 }
  0x8a   :  { %1129 = vmatpush3.msra.mxu0 %v78_v21  ;;  %v92_v35 = vsel %vm88_vm0, %v85_v34, 0.0  ;;  %v112_v42 = vsel %vm88_vm0, %v106_v39, 0.0 }
  0x8b   :  { %96 = vadd.xlane.f32.xlu0 %v95_v33  ;;  %93 = vadd.xlane.f32.xlu1 %v92_v35 }
  0x8c   :  { %1130 = vmatprep.subr.mxu0 %v77_v30 }
  0x8d   :  { %1131 = vmatpush3.msra.mxu0 %v77_v30 }
  0x8e   :  { %1132 = vmatprep.subr.mxu0 %v76_v23 }
  0x8f   :  { %99 = vadd.xlane.f32.xlu0 %v98_v38  ;;  %1133 = vmatpush3.msra.mxu0 %v76_v23 }
  0x90   :  { %110 = vadd.xlane.f32.xlu1 %v109_v40 }
  0x93   :  { %113 = vadd.xlane.f32.xlu0 %v112_v42 }
  0x94   :  { %116 = vadd.xlane.f32.xlu1 %v115_v44 }
  0x97   :  { %119 = vadd.xlane.f32.xlu0 %v118_v45 }
 0x110   :  { %v91_v49 = vpop.xlane.xlu0 %90 }
 0x111   :  { %v130_v56 = vrot.slane %v91_v49, %v1375_v50 }
 0x114   :  { %v94_v54 = vpop.xlane.xlu1 %93  ;;  %v97_v55 = vpop.xlane.xlu0 %96 }
 0x115   :  { %v135_v57 = vrot.slane %v94_v54, %v1378_v51  ;;  %v142_v59 = vrot.slane %v97_v55, %v1381_v53 }
 0x117   :  { %v137_v60 = vsel %vm136_vm1, %v135_v57, %v130_v56 }
 0x118   :  { %v100_v61 = vpop.xlane.xlu0 %99  ;;  %v144_v0 = vsel %vm143_vm2, %v142_v59, %v137_v60 }
 0x119   :  { %v111_v62 = vpop.xlane.xlu1 %110  ;;  %v149_v63 = vrot.slane %v100_v61, %v1386_v58 }
 0x11b   :  { %v151_v1 = vsel %vm150_vm3, %v149_v63, %v144_v0 }
 0x11c   :  { %v114_v2 = vpop.xlane.xlu0 %113  ;;  %v165_v3 = vadd.f32 %v151_v1, %v111_v62 }
 0x11d   :  { %v117_v4 = vpop.xlane.xlu1 %116  ;;  %v166_v5 = vadd.f32 %v151_v1, %v114_v2 }
 0x11e   :  { %v167_v6 = vadd.f32 %v151_v1, %v117_v4  ;;  %vm169_vm4 = vcmp.gt.f32.partialorder %v165_v3, 0.0  ;;  %v173_v8 = vmul.f32 0.2, %v165_v3 }
 0x11f   :  { %vm170_vm5 = vcmp.gt.f32.partialorder %v166_v5, 0.0  ;;  %v174_v9 = vmul.f32 0.2, %v166_v5 }
 0x120   :  { %vm171_vm6 = vcmp.gt.f32.partialorder %v167_v6, 0.0  ;;  %v175_v11 = vmul.f32 0.2, %v167_v6  ;;  %v120_v12 = vpop.xlane.xlu0 %119  ;;  %v177_v13 = vsel %vm169_vm4, %v165_v3, %v173_v8 }
 0x121   :  { %v168_v19 = vadd.f32 %v151_v1, %v120_v12  ;;  %v181_v20 = vadd.f32 %v177_v13, %v1396_v7  ;;  %v178_v21 = vsel %vm170_vm5, %v166_v5, %v174_v9 }
 0x122   :  { %v182_v22 = vadd.f32 %v178_v21, %v1401_v10  ;;  %v179_v23 = vsel %vm171_vm6, %v167_v6, %v175_v11  ;;  %v231_v6 = vsub.s32 3, %v1347_v14 }
 0x123   :  { %vm172_vm7 = vcmp.gt.f32.partialorder %v168_v19, 0.0  ;;  %v176_v25 = vmul.f32 0.2, %v168_v19  ;;  %v185_v26 = vsel %vm88_vm0, %v181_v20, -inf  ;;  %v183_v27 = vadd.f32 %v179_v23, %v1406_v18 }
 0x124   :  { %186 = vmax.xlane.f32.xlu1 %v185_v26  ;;  %v188_v29 = vsel %vm88_vm0, %v182_v22, -inf  ;;  %v232_v8 = vrot.slane %v1353_v16, %v231_v6 }
 0x125   :  { %189 = vmax.xlane.f32.xlu0 %v188_v29  ;;  %v180_v30 = vsel %vm172_vm7, %v168_v19, %v176_v25  ;;  %v191_v32 = vsel %vm88_vm0, %v183_v27, -inf }
 0x126   :  { %v184_v31 = vadd.f32 %v180_v30, %v1415_v28 }
 0x128   :  { %192 = vmax.xlane.f32.xlu1 %v191_v32  ;;  %v194_v33 = vsel %vm88_vm0, %v184_v31, -inf }
 0x129   :  { %195 = vmax.xlane.f32.xlu0 %v194_v33 }
 0x1ad   :  { %v187_v34 = vpop.xlane.xlu1 %186 }
 0x1ae   :  { %v197_v35 = vsub.f32 %v181_v20, %v187_v34  ;;  %v190_v36 = vpop.xlane.xlu0 %189 }
 0x1af   :  { %v198_v37 = vsub.f32 %v182_v22, %v190_v36 }
 0x1b0   :  { %v201_v38 = vmul.f32 1.442695, %v197_v35 }
 0x1b1   :  { %v203_v39 = vmul.f32 1.442695, %v198_v37  ;;  %v193_v40 = vpop.xlane.xlu1 %192 }
 0x1b2   :  { %1207 = vpow2.f32 %v201_v38  ;;  %v199_v41 = vsub.f32 %v183_v27, %v193_v40  ;;  %v196_v42 = vpop.xlane.xlu0 %195 }
 0x1b3   :  { %1209 = vpow2.f32 %v203_v39  ;;  %v200_v43 = vsub.f32 %v184_v31, %v196_v42 }
 0x1b4   :  { %v205_v44 = vmul.f32 1.442695, %v199_v41 }
 0x1b5   :  { %v207_v45 = vmul.f32 1.442695, %v200_v43  ;;  %v42_v43 = vld [vmem:[%s1608_s4 + $0x18] sm:$0xff] }
 0x1b6   :  { %1211 = vpow2.f32 %v205_v44  ;;  %v41_v44 = vld [vmem:[%s1608_s4 + $0x10] sm:$0xff]  ;;  %1140 = vmatprep.subr.mxu1 %v42_v43 }
 0x1b7   :  { %1213 = vpow2.f32 %v207_v45  ;;  %1141 = vmatpush3.msra.mxu1 %v42_v43  ;;  %v40_v45 = vld [vmem:[%s1608_s4 + $0x8] sm:$0xff] }
 0x1b8   :  { %1142 = vmatprep.subr.mxu1 %v41_v44 }
 0x1b9   :  { %1143 = vmatpush3.msra.mxu1 %v41_v44 }
 0x1ba   :  { %1144 = vmatprep.subr.mxu1 %v40_v45 }
 0x1bb   :  { %1145 = vmatpush3.msra.mxu1 %v40_v45 }
 0x1bf   :  { %v1208_v46 = vpop.eup %1207 }
 0x1c0   :  { %v1210_v47 = vpop.eup %1209  ;;  %v209_v48 = vsel %vm88_vm0, %v1208_v46, 0.0 }
 0x1c1   :  { %210 = vadd.xlane.f32.xlu1 %v209_v48  ;;  %v212_v49 = vsel %vm88_vm0, %v1210_v47, 0.0 }
 0x1c2   :  { %213 = vadd.xlane.f32.xlu0 %v212_v49 }
 0x1c3   :  { %v1212_v52 = vpop.eup %1211 }
 0x1c4   :  { %v1214_v54 = vpop.eup %1213  ;;  %v215_v55 = vsel %vm88_vm0, %v1212_v52, 0.0 }
 0x1c5   :  { %216 = vadd.xlane.f32.xlu1 %v215_v55  ;;  %v218_v56 = vsel %vm88_vm0, %v1214_v54, 0.0 }
 0x1c6   :  { %219 = vadd.xlane.f32.xlu0 %v218_v56 }
 0x24a   :  { %v211_v57 = vpop.xlane.xlu1 %210 }
 0x24b   :  { %1215 = vrcp.f32 %v211_v57  ;;  %v214_v59 = vpop.xlane.xlu0 %213 }
 0x24c   :  { %1217 = vrcp.f32 %v214_v59 }
 0x24e   :  { %v217_v60 = vpop.xlane.xlu1 %216 }
 0x24f   :  { %1219 = vrcp.f32 %v217_v60  ;;  %v220_v61 = vpop.xlane.xlu0 %219 }
 0x250   :  { %1221 = vrcp.f32 %v220_v61 }
 0x258   :  { %v1216_v62 = vpop.eup %1215 }
 0x259   :  { %v1218_v63 = vpop.eup %1217  ;;  %v225_v0 = vmul.f32 %v1216_v62, %v1208_v46  ;;  %v39_v46 = vld [vmem:[%s1608_s4] sm:$0xff] }
 0x25a   :  { %v226_v1 = vmul.f32 %v1218_v63, %v1210_v47  ;;  %1146 = vmatprep.subr.mxu1 %v39_v46 }
 0x25b   :  { %1134 = vmatprep.mubr.msk.f32.mxu0 %vm88_vm0, %v225_v0  ;;  %1147 = vmatpush3.msra.mxu1 %v39_v46 }
 0x25c   :  { %v1220_v2 = vpop.eup %1219  ;;  %1135 = vmatmul.mubr.msk.f32.vlgmr.msra.gmra.mxu0 %vm88_vm0, %v226_v1 }
 0x25d   :  { %v1222_v3 = vpop.eup %1221  ;;  %v227_v4 = vmul.f32 %v1220_v2, %v1212_v52 }
 0x25e   :  { %v228_v5 = vmul.f32 %v1222_v3, %v1214_v54 }
 0x25f   :  { %1137 = vmatprep.mubr.msk.f32.mxu0 %vm88_vm0, %v227_v4 }
 0x260   :  { %1138 = vmatmul.mubr.msk.f32.gmra.mxu0 %vm88_vm0, %v228_v5 }
 0x31c   :  { %v1136_v9 = vpop.f32.mrf.mxu0 }
 0x31d   :  { %v1433_v11 = vadd.f32 %v1136_v9, %v232_v8 }
 0x31e   :  { %v311_v12 = vpop.f32.mrf.mxu0 }
 0x31f   :  { %v1435_v13 = vadd.f32 %v311_v12, %v232_v8  ;;  %v350_v20 = vmul.f32 %v1433_v11, %v1433_v11  ;;  %v331_v26 = vsel %vm88_vm0, %v1433_v11, 0.0 }
 0x320   :  { %v1139_v19 = vpop.f32.mrf.mxu0 }
 0x321   :  { %v330_v21 = vsel %vm88_vm0, %v1435_v13, 0.0  ;;  %v349_v22 = vmul.f32 %v1435_v13, %v1435_v13  ;;  %v1443_v23 = vadd.f32 %v1139_v19, %v232_v8  ;;  %v354_v34 = vsel %vm88_vm0, %v350_v20, 0.0 }
 0x322   :  { %v321_v25 = vpop.f32.mrf.mxu0  ;;  %v332_v30 = vadd.f32 %v331_v26, %v330_v21  ;;  %v393_v26 = vsub.s32 4, %v1347_v14 }
 0x323   :  { %v1447_v27 = vadd.f32 %v321_v25, %v232_v8  ;;  %v353_v29 = vsel %vm88_vm0, %v349_v22, 0.0  ;;  %v352_v33 = vmul.f32 %v1443_v23, %v1443_v23  ;;  %v335_v37 = vsel %vm88_vm0, %v1443_v23, 0.0 }
 0x324   :  { %v355_v36 = vadd.f32 %v354_v34, %v353_v29  ;;  %v401_v29 = vsub.s32 5, %v1347_v14 }
 0x325   :  { %v351_v31 = vmul.f32 %v1447_v27, %v1447_v27  ;;  %v333_v32 = vsel %vm88_vm0, %v1447_v27, 0.0  ;;  %v358_v41 = vsel %vm88_vm0, %v352_v33, 0.0 }
 0x326   :  { %v334_v35 = vadd.f32 %v333_v32, %v332_v30  ;;  %v394_v30 = vrot.slane %v1353_v16, %v393_v26 }
 0x327   :  { %v356_v38 = vsel %vm88_vm0, %v351_v31, 0.0 }
 0x328   :  { %v336_v39 = vadd.f32 %v335_v37, %v334_v35  ;;  %v357_v40 = vadd.f32 %v356_v38, %v355_v36  ;;  %v402_v36 = vrot.slane %v1353_v16, %v401_v29 }
 0x32a   :  { %337 = vadd.xlane.f32.xlu1 %v336_v39  ;;  %v359_v42 = vadd.f32 %v358_v41, %v357_v40 }
 0x32c   :  { %360 = vadd.xlane.f32.xlu0 %v359_v42 }
 0x3b3   :  { %v338_v47 = vpop.xlane.xlu1 %337 }
 0x3b4   :  { %v339_v48 = vrot.slane %v338_v47, 4 }
 0x3b5   :  { %v361_v49 = vpop.xlane.xlu0 %360 }
 0x3b6   :  { %v340_v52 = vadd.f32 %v339_v48, %v338_v47  ;;  %v362_v54 = vrot.slane %v361_v49, 4 }
 0x3b8   :  { %v341_v55 = vrot.slane %v340_v52, 2  ;;  %v363_v56 = vadd.f32 %v362_v54, %v361_v49 }
 0x3ba   :  { %v364_v57 = vrot.slane %v363_v56, 2  ;;  %v342_v59 = vadd.f32 %v341_v55, %v340_v52 }
 0x3bc   :  { %v343_v60 = vrot.slane %v342_v59, 1  ;;  %v365_v61 = vadd.f32 %v364_v57, %v363_v56 }
 0x3be   :  { %v344_v62 = vadd.f32 %v343_v60, %v342_v59  ;;  %v366_v63 = vrot.slane %v365_v61, 1 }
 0x3c0   :  { %1193 = vpush %v344_v62  ;;  %v367_v0 = vadd.f32 %v366_v63, %v365_v61 }
 0x3c2   :  { %1195 = vpush %v367_v0 }
 0x3f1   :  { %s1194_s24 = spop %1193 }
 0x3f2   :  { %v346_v1 = vstv %s1194_s24 }
 0x3f3   :  { %v348_v2 = vmul.f32 0.0009765625, %v346_v1  ;;  %s1196_s25 = spop %1195 }
 0x3f4   :  { %v369_v3 = vstv %s1196_s25 }
 0x3f5   :  { %v370_v4 = vmul.f32 0.0009765625, %v369_v3  ;;  %v371_v5 = vmul.f32 %v348_v2, %v348_v2  ;;  %v384_v31 = vsub.f32 %v1433_v11, %v348_v2  ;;  %v385_v32 = vsub.f32 %v1447_v27, %v348_v2 }
 0x3f6   :  { %v386_v33 = vsub.f32 %v1443_v23, %v348_v2  ;;  %v383_v34 = vsub.f32 %v1435_v13, %v348_v2 }
 0x3f7   :  { %v372_v8 = vsub.f32 %v370_v4, %v371_v5  ;;  %v530_v5 = vsub.s32 6, %v1347_v14 }
 0x3f9   :  { %v373_v9 = vmax.f32 %v372_v8, 0.0  ;;  %v531_v8 = vrot.slane %v1353_v16, %v530_v5 }
 0x3fb   :  { %1223 = vrsqrt.f32 %v373_v9  ;;  %vm376_vm8 = vcmp.eq.f32.partialorder %v373_v9, inf  ;;  %v379_v20 = vand.u32 2147483648, %v373_v9  ;;  %vm378_vm9 = vcmp.eq.f32.partialorder %v373_v9, 0.0 }
 0x408   :  { %v1224_v12 = vpop.eup %1223 }
 0x409   :  { %v375_v19 = vmul.f32 %v1224_v12, %v373_v9 }
 0x40b   :  { %v377_v21 = vsel %vm376_vm8, %v373_v9, %v375_v19  ;;  %v550_v9 = vsub.s32 7, %v1347_v14 }
 0x40c   :  { %v380_v22 = vsel %vm378_vm9, %v379_v20, %v377_v21  ;;  %vm1291_vm9 = vmmov 0  }
 0x40d   :  { %v381_v25 = vadd.f32 1e-05, %v380_v22 }
 0x40f   :  { %1225 = vrcp.f32 %v381_v25  ;;  %v551_v25 = vrot.slane %v1353_v16, %v550_v9 }
 0x41c   :  { %v1226_v35 = vpop.eup %1225 }
 0x41d   :  { %v387_v37 = vmul.f32 %v1226_v35, %v383_v34  ;;  %v388_v38 = vmul.f32 %v1226_v35, %v384_v31  ;;  %v389_v39 = vmul.f32 %v1226_v35, %v385_v32  ;;  %v390_v40 = vmul.f32 %v1226_v35, %v386_v33 }
 0x41f   :  { %v395_v41 = vmul.f32 %v394_v30, %v387_v37  ;;  %v396_v42 = vmul.f32 %v394_v30, %v388_v38  ;;  %v397_v43 = vmul.f32 %v394_v30, %v389_v39  ;;  %v398_v44 = vmul.f32 %v394_v30, %v390_v40 }
 0x421   :  { %v403_v45 = vadd.f32 %v402_v36, %v395_v41  ;;  %v404_v46 = vadd.f32 %v402_v36, %v396_v42  ;;  %v405_v11 = vadd.f32 %v402_v36, %v397_v43  ;;  %v406_v47 = vadd.f32 %v402_v36, %v398_v44 }
 0x423   :  { %v411_v27 = vmin.f32 %v403_v45, 0.0  ;;  %v412_v48 = vmin.f32 %v404_v46, 0.0  ;;  %v413_v23 = vmin.f32 %v405_v11, 0.0  ;;  %v414_v49 = vmin.f32 %v406_v47, 0.0 }
 0x424   :  { %vm407_vm10 = vcmp.gt.f32.partialorder %v403_v45, 0.0  ;;  %vm408_vm11 = vcmp.gt.f32.partialorder %v404_v46, 0.0  ;;  %vm409_vm12 = vcmp.gt.f32.partialorder %v405_v11, 0.0  ;;  %vm410_vm13 = vcmp.gt.f32.partialorder %v406_v47, 0.0 }
 0x425   :  { %v415_v13 = vmul.f32 1.442695, %v411_v27  ;;  %v417_v52 = vmul.f32 1.442695, %v412_v48  ;;  %v419_v54 = vmul.f32 1.442695, %v413_v23 }
 0x426   :  { %v421_v55 = vmul.f32 1.442695, %v414_v49 }
 0x427   :  { %1227 = vpow2.f32 %v415_v13 }
 0x428   :  { %1229 = vpow2.f32 %v417_v52 }
 0x429   :  { %1231 = vpow2.f32 %v419_v54 }
 0x42a   :  { %1233 = vpow2.f32 %v421_v55 }
 0x434   :  { %v1228_v56 = vpop.eup %1227 }
 0x435   :  { %v1230_v57 = vpop.eup %1229  ;;  %v1067_v59 = vadd.f32 -1.0, %v1228_v56 }
 0x436   :  { %v1232_v60 = vpop.eup %1231  ;;  %v1068_v61 = vadd.f32 -1.0, %v1230_v57 }
 0x437   :  { %v1234_v62 = vpop.eup %1233  ;;  %v427_v63 = vsel %vm407_vm10, %v403_v45, %v1067_v59  ;;  %v1069_v0 = vadd.f32 -1.0, %v1232_v60  ;;  %vm1047_vm10 = vcmask 123904  }
 0x438   :  { %1148 = vmatprep.mubr.msk.f32.mxu1 %vm88_vm0, %v427_v63  ;;  %v428_v1 = vsel %vm408_vm11, %v404_v46, %v1068_v61  ;;  %v1070_v2 = vadd.f32 -1.0, %v1234_v62 }
 0x439   :  { %1149 = vmatmul.mubr.msk.f32.vlgmr.msra.gmra.mxu1 %vm88_vm0, %v428_v1  ;;  %v429_v3 = vsel %vm409_vm12, %v405_v11, %v1069_v0 }
 0x43a   :  { %1151 = vmatprep.mubr.msk.f32.mxu1 %vm88_vm0, %v429_v3  ;;  %v430_v4 = vsel %vm410_vm13, %v406_v47, %v1070_v2 }
 0x43d   :  { %1152 = vmatmul.mubr.msk.f32.gmra.mxu1 %vm88_vm0, %v430_v4 }
 0x4f9   :  { %v1150_v12 = vpop.f32.mrf.mxu1 }
 0x4fa   :  { %v533_v19 = vmul.f32 %v1150_v12, %v531_v8  ;;  %v553_v34 = vmul.f32 %v1150_v12, %v551_v25 }
 0x4fb   :  { %v509_v20 = vpop.f32.mrf.mxu1 }
 0x4fc   :  { %v539_v21 = vsel %vm88_vm0, %v533_v19, 0.0  ;;  %v532_v22 = vmul.f32 %v531_v8, %v509_v20  ;;  %v552_v16 = vmul.f32 %v551_v25, %v509_v20  ;;  %v559_v36 = vsel %vm88_vm0, %v553_v34, 0.0 }
 0x4fd   :  { %540 = vadd.xlane.f32.xlu0 %v539_v21  ;;  %v1153_v26 = vpop.f32.mrf.mxu1 }
 0x4fe   :  { %1154 = vmatprep.subr.mxu0 %v1153_v26  ;;  %v536_v29 = vsel %vm88_vm0, %v532_v22, 0.0  ;;  %v535_v30 = vmul.f32 %v1153_v26, %v531_v8  ;;  %v555_v37 = vmul.f32 %v1153_v26, %v551_v25  ;;  %v556_v38 = vsel %vm88_vm0, %v552_v16, 0.0 }
 0x4ff   :  { %537 = vadd.xlane.f32.xlu1 %v536_v29  ;;  %v519_v31 = vpop.f32.mrf.mxu1  ;;  %1155 = vmatpush3.msra.mxu0 %v1153_v26 }
 0x500   :  { %1156 = vmatprep.subr.mxu0 %v519_v31  ;;  %v545_v32 = vsel %vm88_vm0, %v535_v30, 0.0  ;;  %v534_v33 = vmul.f32 %v531_v8, %v519_v31  ;;  %v554_v39 = vmul.f32 %v551_v25, %v519_v31  ;;  %v565_v40 = vsel %vm88_vm0, %v555_v37, 0.0 }
 0x501   :  { %546 = vadd.xlane.f32.xlu0 %v545_v32  ;;  %1157 = vmatpush3.msra.mxu0 %v519_v31 }
 0x502   :  { %1158 = vmatprep.subr.mxu0 %v1150_v12  ;;  %v542_v35 = vsel %vm88_vm0, %v534_v33, 0.0  ;;  %v562_v41 = vsel %vm88_vm0, %v554_v39, 0.0 }
 0x503   :  { %1159 = vmatpush3.msra.mxu0 %v1150_v12  ;;  %543 = vadd.xlane.f32.xlu1 %v542_v35 }
 0x504   :  { %1160 = vmatprep.subr.mxu0 %v509_v20 }
 0x505   :  { %560 = vadd.xlane.f32.xlu0 %v559_v36  ;;  %1161 = vmatpush3.msra.mxu0 %v509_v20 }
 0x507   :  { %557 = vadd.xlane.f32.xlu1 %v556_v38 }
 0x509   :  { %566 = vadd.xlane.f32.xlu0 %v565_v40 }
 0x50b   :  { %563 = vadd.xlane.f32.xlu1 %v562_v41 }
 0x586   :  { %v541_v42 = vpop.xlane.xlu0 %540 }
 0x587   :  { %v579_v46 = vrot.slane %v541_v42, %v1378_v51 }
 0x588   :  { %v538_v43 = vpop.xlane.xlu1 %537 }
 0x589   :  { %v575_v44 = vrot.slane %v538_v43, %v1375_v50 }
 0x58a   :  { %v547_v45 = vpop.xlane.xlu0 %546 }
 0x58b   :  { %v580_v27 = vsel %vm136_vm1, %v579_v46, %v575_v44  ;;  %v589_v48 = vrot.slane %v547_v45, %v1386_v58 }
 0x58c   :  { %v544_v11 = vpop.xlane.xlu1 %543 }
 0x58d   :  { %v584_v47 = vrot.slane %v544_v11, %v1381_v53 }
 0x58e   :  { %v561_v23 = vpop.xlane.xlu0 %560 }
 0x58f   :  { %v585_v49 = vsel %vm143_vm2, %v584_v47, %v580_v27 }
 0x590   :  { %v590_v13 = vsel %vm150_vm3, %v589_v48, %v585_v49  ;;  %v558_v52 = vpop.xlane.xlu1 %557  ;;  %v1523_v48 = vld [vmem:[%s1607_s3 + $0x8] sm:$0xf] }
 0x591   :  { %v599_v54 = vadd.f32 %v590_v13, %v561_v23  ;;  %v598_v55 = vadd.f32 %v590_v13, %v558_v52  ;;  %v665_v23 = vrot.slane %v1523_v48, %v74_v15 }
 0x592   :  { %v567_v56 = vpop.xlane.xlu0 %566 }
 0x593   :  { %vm603_vm14 = vcmp.gt.f32.partialorder %v599_v54, 0.0  ;;  %v607_v50 = vmul.f32 0.2, %v599_v54  ;;  %vm602_vm15 = vcmp.gt.f32.partialorder %v598_v55, 0.0  ;;  %v606_v51 = vmul.f32 0.2, %v598_v55 }
 0x594   :  { %v601_v57 = vadd.f32 %v590_v13, %v567_v56  ;;  %v564_v59 = vpop.xlane.xlu1 %563 }
 0x595   :  { %v600_v53 = vadd.f32 %v590_v13, %v564_v59  ;;  %v611_v60 = vsel %vm603_vm14, %v599_v54, %v607_v50  ;;  %v610_v61 = vsel %vm602_vm15, %v598_v55, %v606_v51 }
 0x596   :  { %vm605_vm1 = vcmp.gt.f32.partialorder %v601_v57, 0.0  ;;  %v609_v58 = vmul.f32 0.2, %v601_v57  ;;  %v615_v62 = vadd.f32 %v611_v60, %v1401_v10  ;;  %v614_v63 = vadd.f32 %v610_v61, %v1396_v7 }
 0x597   :  { %vm604_vm2 = vcmp.gt.f32.partialorder %v600_v53, 0.0  ;;  %v608_v0 = vmul.f32 0.2, %v600_v53 }
 0x598   :  { %v621_v1 = vsel %vm88_vm0, %v615_v62, -inf  ;;  %v618_v2 = vsel %vm88_vm0, %v614_v63, -inf  ;;  %v613_v3 = vsel %vm605_vm1, %v601_v57, %v609_v58 }
 0x599   :  { %622 = vmax.xlane.f32.xlu0 %v621_v1  ;;  %619 = vmax.xlane.f32.xlu1 %v618_v2  ;;  %v617_v4 = vadd.f32 %v613_v3, %v1415_v28  ;;  %v612_v5 = vsel %vm604_vm2, %v600_v53, %v608_v0 }
 0x59a   :  { %v616_v8 = vadd.f32 %v612_v5, %v1406_v18 }
 0x59b   :  { %v627_v9 = vsel %vm88_vm0, %v617_v4, -inf }
 0x59c   :  { %v624_v10 = vsel %vm88_vm0, %v616_v8, -inf }
 0x59d   :  { %628 = vmax.xlane.f32.xlu0 %v627_v9  ;;  %625 = vmax.xlane.f32.xlu1 %v624_v10 }
 0x622   :  { %v623_v7 = vpop.xlane.xlu0 %622  ;;  %v620_v12 = vpop.xlane.xlu1 %619 }
 0x623   :  { %v631_v19 = vsub.f32 %v615_v62, %v623_v7  ;;  %v630_v20 = vsub.f32 %v614_v63, %v620_v12  ;;  %v46_v7 = vld [vmem:[%s1608_s4 + $0x38] sm:$0xff]  ;;  %v45_v12 = vld [vmem:[%s1608_s4 + $0x30] sm:$0xff] }
 0x624   :  { %1168 = vmatprep.subr.mxu1 %v46_v7 }
 0x625   :  { %v636_v21 = vmul.f32 1.442695, %v631_v19  ;;  %v634_v22 = vmul.f32 1.442695, %v630_v20  ;;  %1169 = vmatpush3.msra.mxu1 %v46_v7  ;;  %v44_v19 = vld [vmem:[%s1608_s4 + $0x28] sm:$0xff]  ;;  %v43_v20 = vld [vmem:[%s1608_s4 + $0x20] sm:$0xff] }
 0x626   :  { %v629_v25 = vpop.xlane.xlu0 %628  ;;  %v626_v26 = vpop.xlane.xlu1 %625  ;;  %1170 = vmatprep.subr.mxu1 %v45_v12 }
 0x627   :  { %1235 = vpow2.f32 %v636_v21  ;;  %v633_v29 = vsub.f32 %v617_v4, %v629_v25  ;;  %v632_v28 = vsub.f32 %v616_v8, %v626_v26  ;;  %1171 = vmatpush3.msra.mxu1 %v45_v12 }
 0x628   :  { %1237 = vpow2.f32 %v634_v22  ;;  %1172 = vmatprep.subr.mxu1 %v44_v19 }
 0x629   :  { %v640_v30 = vmul.f32 1.442695, %v633_v29  ;;  %v638_v18 = vmul.f32 1.442695, %v632_v28  ;;  %1173 = vmatpush3.msra.mxu1 %v44_v19 }
 0x62a   :  { %1174 = vmatprep.subr.mxu1 %v43_v20 }
 0x62b   :  { %1239 = vpow2.f32 %v640_v30  ;;  %1175 = vmatpush3.msra.mxu1 %v43_v20 }
 0x62c   :  { %1241 = vpow2.f32 %v638_v18 }
 0x634   :  { %v1236_v31 = vpop.eup %1235 }
 0x635   :  { %v1238_v32 = vpop.eup %1237  ;;  %v645_v33 = vsel %vm88_vm0, %v1236_v31, 0.0 }
 0x636   :  { %646 = vadd.xlane.f32.xlu0 %v645_v33  ;;  %v642_v34 = vsel %vm88_vm0, %v1238_v32, 0.0 }
 0x637   :  { %643 = vadd.xlane.f32.xlu1 %v642_v34 }
 0x638   :  { %v1240_v35 = vpop.eup %1239 }
 0x639   :  { %v1242_v16 = vpop.eup %1241  ;;  %v651_v36 = vsel %vm88_vm0, %v1240_v35, 0.0 }
 0x63a   :  { %652 = vadd.xlane.f32.xlu0 %v651_v36  ;;  %v648_v37 = vsel %vm88_vm0, %v1242_v16, 0.0 }
 0x63b   :  { %649 = vadd.xlane.f32.xlu1 %v648_v37 }
 0x6bf   :  { %v647_v38 = vpop.xlane.xlu0 %646 }
 0x6c0   :  { %1243 = vrcp.f32 %v647_v38  ;;  %v644_v39 = vpop.xlane.xlu1 %643 }
 0x6c1   :  { %1245 = vrcp.f32 %v644_v39 }
 0x6c3   :  { %v653_v40 = vpop.xlane.xlu0 %652 }
 0x6c4   :  { %1247 = vrcp.f32 %v653_v40  ;;  %v650_v41 = vpop.xlane.xlu1 %649 }
 0x6c5   :  { %1249 = vrcp.f32 %v650_v41 }
 0x6cd   :  { %v1244_v42 = vpop.eup %1243 }
 0x6ce   :  { %v1246_v43 = vpop.eup %1245  ;;  %v659_v44 = vmul.f32 %v1244_v42, %v1236_v31 }
 0x6cf   :  { %v658_v45 = vmul.f32 %v1246_v43, %v1238_v32 }
 0x6d1   :  { %v1248_v46 = vpop.eup %1247  ;;  %1162 = vmatprep.mubr.msk.f32.mxu0 %vm88_vm0, %v658_v45 }
 0x6d2   :  { %v1250_v11 = vpop.eup %1249  ;;  %1163 = vmatmul.mubr.msk.f32.vlgmr.msra.gmra.mxu0 %vm88_vm0, %v659_v44  ;;  %v661_v47 = vmul.f32 %v1248_v46, %v1240_v35 }
 0x6d3   :  { %v660_v27 = vmul.f32 %v1250_v11, %v1242_v16 }
 0x6d5   :  { %1165 = vmatprep.mubr.msk.f32.mxu0 %vm88_vm0, %v660_v27  ;;  %v826_v27 = vrot.slane %v1523_v48, %v82_v17 }
 0x6d6   :  { %1166 = vmatmul.mubr.msk.f32.gmra.mxu0 %vm88_vm0, %v661_v47 }
 0x792   :  { %v1164_v49 = vpop.f32.mrf.mxu0 }
 0x793   :  { %v1528_v13 = vadd.f32 %v1164_v49, %v665_v23 }
 0x794   :  { %v744_v52 = vpop.f32.mrf.mxu0 }
 0x795   :  { %v1530_v54 = vadd.f32 %v744_v52, %v665_v23  ;;  %v782_v56 = vmul.f32 %v1528_v13, %v1528_v13  ;;  %v764_v15 = vsel %vm88_vm0, %v1528_v13, 0.0 }
 0x796   :  { %v1167_v55 = vpop.f32.mrf.mxu0 }
 0x797   :  { %v763_v50 = vsel %vm88_vm0, %v1530_v54, 0.0  ;;  %v781_v51 = vmul.f32 %v1530_v54, %v1530_v54  ;;  %v1538_v57 = vadd.f32 %v1167_v55, %v665_v23  ;;  %v786_v0 = vsel %vm88_vm0, %v782_v56, 0.0 }
 0x798   :  { %v754_v59 = vpop.f32.mrf.mxu0  ;;  %v765_v61 = vadd.f32 %v764_v15, %v763_v50  ;;  %v834_v50 = vrot.slane %v1523_v48, %v103_v24 }
 0x799   :  { %v1542_v53 = vadd.f32 %v754_v59, %v665_v23  ;;  %v785_v60 = vsel %vm88_vm0, %v781_v51, 0.0  ;;  %v784_v63 = vmul.f32 %v1538_v57, %v1538_v57  ;;  %v768_v3 = vsel %vm88_vm0, %v1538_v57, 0.0 }
 0x79a   :  { %v787_v2 = vadd.f32 %v786_v0, %v785_v60 }
 0x79b   :  { %v783_v58 = vmul.f32 %v1542_v53, %v1542_v53  ;;  %v766_v62 = vsel %vm88_vm0, %v1542_v53, 0.0  ;;  %v790_v9 = vsel %vm88_vm0, %v784_v63, 0.0 }
 0x79c   :  { %v767_v1 = vadd.f32 %v766_v62, %v765_v61 }
 0x79d   :  { %v788_v4 = vsel %vm88_vm0, %v783_v58, 0.0 }
 0x79e   :  { %v769_v5 = vadd.f32 %v768_v3, %v767_v1  ;;  %v789_v8 = vadd.f32 %v788_v4, %v787_v2 }
 0x7a0   :  { %770 = vadd.xlane.f32.xlu1 %v769_v5  ;;  %v791_v10 = vadd.f32 %v790_v9, %v789_v8 }
 0x7a2   :  { %792 = vadd.xlane.f32.xlu0 %v791_v10 }
 0x829   :  { %v771_v21 = vpop.xlane.xlu1 %770 }
 0x82a   :  { %v772_v22 = vrot.slane %v771_v21, 4 }
 0x82b   :  { %v793_v25 = vpop.xlane.xlu0 %792 }
 0x82c   :  { %v773_v26 = vadd.f32 %v772_v22, %v771_v21  ;;  %v794_v29 = vrot.slane %v793_v25, 4 }
 0x82e   :  { %v774_v28 = vrot.slane %v773_v26, 2  ;;  %v795_v30 = vadd.f32 %v794_v29, %v793_v25 }
 0x830   :  { %v775_v18 = vadd.f32 %v774_v28, %v773_v26  ;;  %v796_v31 = vrot.slane %v795_v30, 2  ;;  %v1290_v28 = vmov 0.0  }
 0x831   :  { %1182 = vmatprep.subr.mxu0 %v1290_v28  ;;  %1190 = vmatprep.mubr.msk.f32.mxu0 %vm1291_vm9, %v1290_v28 }
 0x832   :  { %v797_v32 = vadd.f32 %v796_v31, %v795_v30  ;;  %v776_v33 = vrot.slane %v775_v18, 1  ;;  %v50_v31 = vld [vmem:[%s1608_s4 + $0x58] sm:$0xff] }
 0x834   :  { %v777_v34 = vadd.f32 %v776_v33, %v775_v18  ;;  %v798_v35 = vrot.slane %v797_v32, 1  ;;  %v49_v33 = vld [vmem:[%s1608_s4 + $0x50] sm:$0xff] }
 0x836   :  { %1197 = vpush %v777_v34  ;;  %v799_v16 = vadd.f32 %v798_v35, %v797_v32  ;;  %v48_v35 = vld [vmem:[%s1608_s4 + $0x48] sm:$0xff] }
 0x838   :  { %1199 = vpush %v799_v16 }
 0x867   :  { %s1198_s10 = spop %1197 }
 0x868   :  { %v779_v36 = vstv %s1198_s10 }
 0x869   :  { %v780_v37 = vmul.f32 0.0009765625, %v779_v36  ;;  %s1200_s0 = spop %1199 }
 0x86a   :  { %v801_v38 = vstv %s1200_s0 }
 0x86b   :  { %v802_v39 = vmul.f32 0.0009765625, %v801_v38  ;;  %v803_v40 = vmul.f32 %v780_v37, %v780_v37  ;;  %v815_v23 = vsub.f32 %v1530_v54, %v780_v37  ;;  %v816_v49 = vsub.f32 %v1528_v13, %v780_v37 }
 0x86c   :  { %v817_v52 = vsub.f32 %v1542_v53, %v780_v37  ;;  %v818_v55 = vsub.f32 %v1538_v57, %v780_v37  ;;  %v47_v37 = vld [vmem:[%s1608_s4 + $0x40] sm:$0xff] }
 0x86d   :  { %v804_v41 = vsub.f32 %v802_v39, %v803_v40  ;;  %v51_v40 = vld [vmem:[%s1608_s4 + $0x60] sm:$0x3]  ;;  %s1267_s4 = scalar_lea.vmem %s1056_s20, 32 }
 0x86e   :  { %p1268_p0 = scmp.ne.s32.totalorder %s1056_s20, %s1267_s4  ;;  %p1273_p2 = scmp.lt.s32.totalorder %s1267_s4, %s1267_s4 }
 0x86f   :  { %v805_v42 = vmax.f32 %v804_v41, 0.0  ;;  %v967_v41 = vrot.slane %v1523_v48, %v231_v6 }
 0x870   :  { %p1274_p3 = por %p1273_p2, %p1272_p1 }
 0x871   :  { %1251 = vrsqrt.f32 %v805_v42  ;;  %vm808_vm3 = vcmp.eq.f32.partialorder %v805_v42, inf  ;;  %v811_v45 = vand.u32 2147483648, %v805_v42  ;;  %vm810_vm4 = vcmp.eq.f32.partialorder %v805_v42, 0.0 }
 0x872   :  { %p1275_p4 = pnand %p1274_p3, %p1268_p0 }
 0x87e   :  { %v1252_v43 = vpop.eup %1251 }
 0x87f   :  { %v807_v44 = vmul.f32 %v1252_v43, %v805_v42 }
 0x881   :  { %v809_v46 = vsel %vm808_vm3, %v805_v42, %v807_v44 }
 0x882   :  { %v812_v11 = vsel %vm810_vm4, %v811_v45, %v809_v46 }
 0x883   :  { %v813_v47 = vadd.f32 1e-05, %v812_v11 }
 0x885   :  { %1253 = vrcp.f32 %v813_v47 }
 0x892   :  { %v1254_v56 = vpop.eup %1253 }
 0x893   :  { %v819_v51 = vmul.f32 %v1254_v56, %v815_v23  ;;  %v820_v59 = vmul.f32 %v1254_v56, %v816_v49  ;;  %v821_v15 = vmul.f32 %v1254_v56, %v817_v52  ;;  %v822_v60 = vmul.f32 %v1254_v56, %v818_v55 }
 0x895   :  { %v827_v61 = vmul.f32 %v826_v27, %v819_v51  ;;  %v828_v58 = vmul.f32 %v826_v27, %v820_v59  ;;  %v829_v17 = vmul.f32 %v826_v27, %v821_v15  ;;  %v830_v62 = vmul.f32 %v826_v27, %v822_v60 }
 0x897   :  { %v835_v54 = vadd.f32 %v834_v50, %v827_v61  ;;  %v836_v63 = vadd.f32 %v834_v50, %v828_v58  ;;  %v837_v13 = vadd.f32 %v834_v50, %v829_v17  ;;  %v838_v0 = vadd.f32 %v834_v50, %v830_v62 }
 0x899   :  { %v843_v53 = vmin.f32 %v835_v54, 0.0  ;;  %v844_v1 = vmin.f32 %v836_v63, 0.0  ;;  %v845_v57 = vmin.f32 %v837_v13, 0.0  ;;  %v846_v2 = vmin.f32 %v838_v0, 0.0 }
 0x89a   :  { %vm839_vm5 = vcmp.gt.f32.partialorder %v835_v54, 0.0  ;;  %vm840_vm6 = vcmp.gt.f32.partialorder %v836_v63, 0.0  ;;  %vm841_vm7 = vcmp.gt.f32.partialorder %v837_v13, 0.0  ;;  %vm842_vm8 = vcmp.gt.f32.partialorder %v838_v0, 0.0 }
 0x89b   :  { %v847_v3 = vmul.f32 1.442695, %v843_v53  ;;  %v849_v4 = vmul.f32 1.442695, %v844_v1  ;;  %v851_v5 = vmul.f32 1.442695, %v845_v57 }
 0x89c   :  { %v853_v24 = vmul.f32 1.442695, %v846_v2 }
 0x89d   :  { %1255 = vpow2.f32 %v847_v3 }
 0x89e   :  { %1257 = vpow2.f32 %v849_v4 }
 0x89f   :  { %1259 = vpow2.f32 %v851_v5 }
 0x8a0   :  { %1261 = vpow2.f32 %v853_v24 }
 0x8aa   :  { %v1256_v8 = vpop.eup %1255 }
 0x8ab   :  { %v1258_v9 = vpop.eup %1257  ;;  %v1079_v10 = vadd.f32 -1.0, %v1256_v8 }
 0x8ac   :  { %v1260_v7 = vpop.eup %1259  ;;  %v1080_v12 = vadd.f32 -1.0, %v1258_v9 }
 0x8ad   :  { %v1262_v19 = vpop.eup %1261  ;;  %v859_v20 = vsel %vm839_vm5, %v835_v54, %v1079_v10  ;;  %v1081_v21 = vadd.f32 -1.0, %v1260_v7 }
 0x8ae   :  { %1176 = vmatprep.mubr.msk.f32.mxu1 %vm88_vm0, %v859_v20  ;;  %v860_v22 = vsel %vm840_vm6, %v836_v63, %v1080_v12  ;;  %v1082_v25 = vadd.f32 -1.0, %v1262_v19 }
 0x8af   :  { %1177 = vmatmul.mubr.msk.f32.vlgmr.msra.gmra.mxu1 %vm88_vm0, %v860_v22  ;;  %v861_v26 = vsel %vm841_vm7, %v837_v13, %v1081_v21 }
 0x8b0   :  { %1179 = vmatprep.mubr.msk.f32.mxu1 %vm88_vm0, %v861_v26  ;;  %v862_v29 = vsel %vm842_vm8, %v838_v0, %v1082_v25 }
 0x8b3   :  { %1180 = vmatmul.mubr.msk.f32.gmra.mxu1 %vm88_vm0, %v862_v29 }
 0x96f   :  { %v1178_v30 = vpop.f32.mrf.mxu1 }
 0x970   :  { %v961_v38 = vmul.f32 %v1178_v30, %v48_v35 }
 0x971   :  { %v941_v18 = vpop.f32.mrf.mxu1 }
 0x972   :  { %v960_v39 = vmul.f32 %v941_v18, %v47_v37 }
 0x973   :  { %v1181_v32 = vpop.f32.mrf.mxu1 }
 0x974   :  { %v963_v34 = vmul.f32 %v1181_v32, %v50_v31 }
 0x975   :  { %v951_v16 = vpop.f32.mrf.mxu1 }
 0x976   :  { %v962_v36 = vmul.f32 %v951_v16, %v49_v33  ;;  %1183 = vmatpush3.msra.mxu0 %v963_v34 }
 0x977   :  { %1184 = vmatprep.subr.mxu0 %v1290_v28 }
 0x978   :  { %1185 = vmatpush3.msra.mxu0 %v962_v36 }
 0x979   :  { %1186 = vmatprep.subr.mxu0 %v1290_v28 }
 0x97a   :  { %1187 = vmatpush3.msra.mxu0 %v961_v38 }
 0x97b   :  { %1188 = vmatprep.subr.mxu0 %v1290_v28 }
 0x97c   :  { %1189 = vmatpush3.msra.mxu0 %v960_v39 }
 0x97d   :  { %1191 = vmatmul.mubr.msk.f32.vlgmr.msra.gmra.mxu0 %vm88_vm0, %v51_v40 }
 0xa3d   :  { %v1037_v42 = vpop.f32.mrf.mxu0 }
 0xa3e   :  { %v1038_v43 = vadd.f32 %v1037_v42, %v967_v41 }
 0xa3f   :  { %v1192_v44 = vpop.f32.mrf.mxu0 }
 0xa40   :  { %v1088_v45 = vmul.f32 -1.442695, %v1038_v43 }
 0xa42   :  { %1263 = vpow2.f32 %v1088_v45 }
 0xa4f   :  { %v1264_v46 = vpop.eup %1263 }
 0xa50   :  { %v1044_v11 = vadd.f32 1.0, %v1264_v46 }
 0xa52   :  { %1265 = vrcp.f32 %v1044_v11 }
 0xa5f   :  { %v1266_v47 = vpop.eup %1265 }
 0xa60   :  { %1048 = vst.msk [vmem:[#allocation2] sm:$0x3] %vm1047_vm10, %v1266_v47 }
 0xa61   :  { %1278 = shalt.err (!%p1275_p4)
}
 0xa62   :  { %1058 = dma.vmem_to_hbm [thread:$0]  %s1056_s20, 32, %s1609_s5, [#allocation3]  }
 0xa63   :  { %1287 = dma.done.wait [#allocation3], 32  }
 0xa64   :  { %1288 = vsyncadd [#allocation3], 4294967264 }
 0xa65   :  { %1062 = vsyncpa [#allocation3], 1 }

</bundles_post_ra>
